<compile_context>
chip_gen: v6e
topology: v6e:2x2x1
jax: 0.10.0
libtpu: 0.0.40
codegen_flags: <defaults>
</compile_context>

<pallas_src>
import functools
import math

import numpy as np
import jax
import jax.numpy as jnp
from jax import lax
from jax.experimental import pallas as pl
from jax.experimental.pallas import tpu as pltpu

MODEL_PI = 3.1415926535        # constant used by the torch module's filter bank
INV_SQRT2 = float(1.0 / math.sqrt(2.0))
VMEM_LIMIT = 48 * 1024 * 1024  # <= v7x's 64 MiB physical, well under v5e/v6e 128 MiB
FT_VMEM_BUDGET = 36 * 1024 * 1024

# Set True on v6e/v7x for ~3x MXU throughput on the dense (non-DFT) matmuls.
# The rfft/irfft DFT round trip and the cross-modal gate path stay f32.
DENSE_MXU_BF16 = False


# ============================ shared in-kernel helpers ============================

def _mxu_dot(a, b, bf16=False):
    if bf16:
        a = a.astype(jnp.bfloat16)
        b = b.astype(jnp.bfloat16)
    return jnp.dot(a, b, preferred_element_type=jnp.float32)


def _gelu(x):  # exact (erf) GELU == nn.GELU() default
    return 0.5 * x * (1.0 + lax.erf(x * INV_SQRT2))


def _ln(x, g, b):
    mu = jnp.mean(x, axis=-1, keepdims=True)
    var = jnp.mean((x - mu) ** 2, axis=-1, keepdims=True)
    return (x - mu) * lax.rsqrt(var + 1e-5) * g + b


def _round_up(x, m):
    return ((x + m - 1) // m) * m


def _row_tile(rows, max_tile=1024):
    """Largest row tile <= max_tile that divides rows (multiple of 8 if tiled)."""
    if rows <= max_tile:
        return rows
    start = max_tile - (max_tile % 8)
    for t in range(start, 7, -8):
        if rows % t == 0:
            return t
    return rows  # fallback: single (possibly large) block


def _pool_tile_seq(n_seq, b, max_rows=2048, max_unroll=64):
    """Seq positions per block for the pooled AddNorm (rows = tseq*b)."""
    cap = max(1, min(n_seq, max_unroll, max_rows // max(b, 1)))
    for tseq in range(cap, 0, -1):
        if n_seq % tseq == 0 and (tseq == n_seq or (tseq * b) % 8 == 0):
            return tseq
    return n_seq


def _ft_vmem_bytes(tb, d, s_full, n_full, s_pad, n_pad):
    """Rough per-step VMEM estimate for the ft_freq kernel (f32)."""
    fl = 4
    tbd = tb * d
    act = (s_full + n_full) * tbd * fl
    io = 2 * 2 * act                                        # in + out, double-buffered
    dft = 2 * 2 * (s_pad * s_full + n_pad * n_full) * fl    # 8 DFT matrices
    small = 2 * (4 * (s_pad + n_pad) * d + 2 * d * d
                 + (s_full + n_full) * d + 4 * d) * fl      # banks/P/Q/pe/conv
    temps = 8 * (s_pad + n_pad) * tbd * fl                  # live spectral temporaries
    return io + dft + small + temps


def _pick_tb(b, d, s_full, n_full, s_pad, n_pad, budget=FT_VMEM_BUDGET):
    """Batch-block size for ft_freq: lane width tb*d must be a multiple of 128
    (or the whole batch); prefer >=512 lanes and >=2 grid blocks within budget."""
    cands = [tb for tb in range(1, b + 1)
             if b % tb == 0 and (tb == b or (tb * d) % 128 == 0)]
    fits = [tb for tb in cands
            if _ft_vmem_bytes(tb, d, s_full, n_full, s_pad, n_pad) <= budget]
    pool = fits if fits else cands[:1]
    for target in (512, 256, 128):
        wide = [tb for tb in pool if tb * d >= target]
        if wide:
            return min(wide)   # smallest tb hitting the lane target -> most grid blocks
    return max(pool)


# ============================ tiled linear kernels ============================

def _linear_kernel(x_ref, w_ref, b_ref, o_ref, *, act, dense_bf16):
    y = _mxu_dot(x_ref[...], w_ref[...], dense_bf16) + b_ref[...]
    if act == "gelu":
        y = _gelu(y)
    elif act == "relu":
        y = jnp.maximum(y, 0.0)
    o_ref[...] = y


def linear(x, w, b, act="none"):
    rows, k = x.shape
    n = w.shape[1]
    tile = _row_tile(rows)
    return pl.pallas_call(
        functools.partial(_linear_kernel, act=act, dense_bf16=DENSE_MXU_BF16),
        grid=(rows // tile,),
        in_specs=[pl.BlockSpec((tile, k), lambda i: (i, 0)),
                  pl.BlockSpec((k, n), lambda i: (0, 0)),
                  pl.BlockSpec((1, n), lambda i: (0, 0))],
        out_specs=pl.BlockSpec((tile, n), lambda i: (i, 0)),
        out_shape=jax.ShapeDtypeStruct((rows, n), jnp.float32),
        compiler_params=pltpu.CompilerParams(
            dimension_semantics=("parallel",), vmem_limit_bytes=VMEM_LIMIT),
    )(x, w, b)


def _linear_ln_kernel(x_ref, w_ref, b_ref, g_ref, beta_ref, o_ref, *, dense_bf16):
    y = _mxu_dot(x_ref[...], w_ref[...], dense_bf16) + b_ref[...]
    o_ref[...] = _ln(y, g_ref[...], beta_ref[...])


def linear_ln(x, w, b, g, beta):
    """Fused Linear -> LayerNorm (the text encoder)."""
    rows, k = x.shape
    n = w.shape[1]
    tile = _row_tile(rows)
    return pl.pallas_call(
        functools.partial(_linear_ln_kernel, dense_bf16=DENSE_MXU_BF16),
        grid=(rows // tile,),
        in_specs=[pl.BlockSpec((tile, k), lambda i: (i, 0)),
                  pl.BlockSpec((k, n), lambda i: (0, 0)),
                  pl.BlockSpec((1, n), lambda i: (0, 0)),
                  pl.BlockSpec((1, n), lambda i: (0, 0)),
                  pl.BlockSpec((1, n), lambda i: (0, 0))],
        out_specs=pl.BlockSpec((tile, n), lambda i: (i, 0)),
        out_shape=jax.ShapeDtypeStruct((rows, n), jnp.float32),
        compiler_params=pltpu.CompilerParams(
            dimension_semantics=("parallel",), vmem_limit_bytes=VMEM_LIMIT),
    )(x, w, b, g, beta)


# ============================ fused AddNorm kernels ============================
# torch AddNorm with dropout=0:  x = LN1(a); x_ = x; x = Linear(GELU(Linear(x))) + x_;
# out = LN2(x).  The residual add (freq_out + input) is already fused into ft_freq,
# so `a` here is a single stream.

def _addnorm_core(a, g1, b1, w1, c1, w2, c2, g2, b2, dense_bf16):
    x = _ln(a, g1, b1)
    h = _gelu(_mxu_dot(x, w1, dense_bf16) + c1)
    h = _mxu_dot(h, w2, dense_bf16) + c2
    return _ln(h + x, g2, b2)


def _addnorm_kernel(a_ref, g1_ref, b1_ref, w1_ref, c1_ref,
                    w2_ref, c2_ref, g2_ref, b2_ref, o_ref, *, dense_bf16):
    o_ref[...] = _addnorm_core(a_ref[...], g1_ref[...], b1_ref[...],
                               w1_ref[...], c1_ref[...], w2_ref[...], c2_ref[...],
                               g2_ref[...], b2_ref[...], dense_bf16)


def add_norm(a, p):
    rows, d = a.shape
    tile = _row_tile(rows)
    row_spec = pl.BlockSpec((tile, d), lambda i: (i, 0))
    vec = pl.BlockSpec((1, d), lambda i: (0, 0))
    mat = pl.BlockSpec((d, d), lambda i: (0, 0))
    return pl.pallas_call(
        functools.partial(_addnorm_kernel, dense_bf16=DENSE_MXU_BF16),
        grid=(rows // tile,),
        in_specs=[row_spec, vec, vec, mat, vec, mat, vec, vec, vec],
        out_specs=row_spec,
        out_shape=jax.ShapeDtypeStruct((rows, d), jnp.float32),
        compiler_params=pltpu.CompilerParams(
            dimension_semantics=("parallel",), vmem_limit_bytes=VMEM_LIMIT),
    )(a, p["ln1_g"], p["ln1_b"], p["ff_w1"], p["ff_b1"],
      p["ff_w2"], p["ff_b2"], p["ln2_g"], p["ln2_b"])


def _addnorm_pool_kernel(a_ref, g1_ref, b1_ref, w1_ref, c1_ref,
                         w2_ref, c2_ref, g2_ref, b2_ref, pool_ref,
                         *, tseq, b, dense_bf16):
    """AddNorm + max-pool over the seq axis.  Rows are (seq-major, batch-minor);
    each block holds `tseq` full batch groups.  The (B, D) pooled output is an
    accumulator across grid steps (constant output block)."""
    y = _addnorm_core(a_ref[...], g1_ref[...], b1_ref[...],
                      w1_ref[...], c1_ref[...], w2_ref[...], c2_ref[...],
                      g2_ref[...], b2_ref[...], dense_bf16)   # (tseq*b, d)
    blk = y[0:b, :]
    for j in range(1, tseq):
        blk = jnp.maximum(blk, y[j * b:(j + 1) * b, :])

    @pl.when(pl.program_id(0) == 0)
    def _():
        pool_ref[...] = blk

    @pl.when(pl.program_id(0) > 0)
    def _():
        pool_ref[...] = jnp.maximum(pool_ref[...], blk)


def add_norm_pool(a, p, n_seq, b):
    rows, d = a.shape     # rows == n_seq * b
    tseq = _pool_tile_seq(n_seq, b)
    tile = tseq * b
    row_spec = pl.BlockSpec((tile, d), lambda i: (i, 0))
    vec = pl.BlockSpec((1, d), lambda i: (0, 0))
    mat = pl.BlockSpec((d, d), lambda i: (0, 0))
    return pl.pallas_call(
        functools.partial(_addnorm_pool_kernel, tseq=tseq, b=b,
                          dense_bf16=DENSE_MXU_BF16),
        grid=(n_seq // tseq,),
        in_specs=[row_spec, vec, vec, mat, vec, mat, vec, vec, vec],
        out_specs=pl.BlockSpec((b, d), lambda i: (0, 0)),
        out_shape=jax.ShapeDtypeStruct((b, d), jnp.float32),
        compiler_params=pltpu.CompilerParams(
            dimension_semantics=("arbitrary",), vmem_limit_bytes=VMEM_LIMIT),
    )(a, p["ln1_g"], p["ln1_b"], p["ff_w1"], p["ff_b1"],
      p["ff_w2"], p["ff_b2"], p["ln2_g"], p["ln2_b"])


# ============================ frequency-domain layer ============================

def _ft_freq_kernel(text_ref, image_ref,
                    ftc_ref, fts_ref, fic_ref, fis_ref,
                    gtc_ref, gts_ref, gic_ref, gis_ref,
                    fbt_re_ref, fbt_im_ref, fbi_re_ref, fbi_im_ref,
                    p_re_ref, p_im_ref, wi2t_ref, bi2t_ref,
                    q_re_ref, q_im_ref, wt2i_ref, bt2i_ref,
                    pe_t_ref, pe_i_ref,
                    otext_ref, oimg_ref, *, tb, d, add_pos):
    f32dot = functools.partial(_mxu_dot, bf16=False)   # DFT path stays f32

    def tile(x):                 # replicate a (·, d) constant across tb batch items
        return x if tb == 1 else jnp.concatenate([x] * tb, axis=-1)

    def gate(pooled, w_ref, b_ref):
        # conv1x1 over channels per batch item: (1, d) @ (d, d) + bias, per slice
        w = w_ref[...]
        bias = b_ref[...]
        parts = [f32dot(pooled[:, j * d:(j + 1) * d], w) + bias for j in range(tb)]
        return parts[0] if tb == 1 else jnp.concatenate(parts, axis=-1)

    xt = text_ref[...]           # (S_full, tb*d)
    xi = image_ref[...]          # (N_full, tb*d)
    if add_pos:                  # layer 0: fold positional embeddings (part of residual)
        xt = xt + tile(pe_t_ref[...])
        xi = xi + tile(pe_i_ref[...])

    # ---- image branch: rfft(dim=1, 'ortho') -> filter bank ------------------
    i_re = f32dot(fic_ref[...], xi)
    i_im = f32dot(fis_ref[...], xi)
    pi_re = i_re * i_re - i_im * i_im          # power = x*x (complex square)
    pi_im = 2.0 * i_re * i_im
    fbi_re = tile(fbi_re_ref[...])
    fbi_im = tile(fbi_im_ref[...])
    ire = pi_re * fbi_re - pi_im * fbi_im      # 1/n and sum_k bank*cos folded at init
    iim = pi_re * fbi_im + pi_im * fbi_re

    # Image2TextGate pooled input (avg-pool 1/n folded into P at init)
    gi = jnp.sum(ire * tile(p_re_ref[...]) - iim * tile(p_im_ref[...]),
                 axis=0, keepdims=True)        # (1, tb*d)
    g_img = gate(gi, wi2t_ref, bi2t_ref)

    # ---- text branch: rfft -> filter -> image-gate -> irfft (+residual) -----
    t_re = f32dot(ftc_ref[...], xt)
    t_im = f32dot(fts_ref[...], xt)
    pt_re = t_re * t_re - t_im * t_im
    pt_im = 2.0 * t_re * t_im
    fbt_re = tile(fbt_re_ref[...])
    fbt_im = tile(fbt_im_ref[...])
    tre = (pt_re * fbt_re - pt_im * fbt_im) * g_img
    tim = (pt_re * fbt_im + pt_im * fbt_re) * g_img

    gt = jnp.sum(tre * tile(q_re_ref[...]) - tim * tile(q_im_ref[...]),
                 axis=0, keepdims=True)        # text->image gate pooled input
    otext_ref[...] = f32dot(gtc_ref[...], tre) + f32dot(gts_ref[...], tim) + xt

    # ---- Text2ImageGate (on the updated text spectrum), image irfft ---------
    g_txt = gate(gt, wt2i_ref, bt2i_ref)
    ire = ire * g_txt
    iim = iim * g_txt
    oimg_ref[...] = f32dot(gic_ref[...], ire) + f32dot(gis_ref[...], iim) + xi


def ft_freq(text_t, image_t, common, lp, tb, d, add_pos, pe_t, pe_i):
    """text_t: (S_full, B*D), image_t: (N_full, B*D) in (seq, batch*feat) layout.
    Outputs already include the residual (irfft + input, with pos-embed on layer 0)."""
    s_full, bd = text_t.shape
    n_full, _ = image_t.shape
    b = bd // d
    tbd = tb * d
    n_blocks = b // tb
    s_pad = common["ftc"].shape[0]
    n_pad = common["fic"].shape[0]

    const = lambda shape: pl.BlockSpec(shape, lambda i: (0, 0))
    in_specs = [
        pl.BlockSpec((s_full, tbd), lambda i: (0, i)),
        pl.BlockSpec((n_full, tbd), lambda i: (0, i)),
        const((s_pad, s_full)), const((s_pad, s_full)),
        const((n_pad, n_full)), const((n_pad, n_full)),
        const((s_full, s_pad)), const((s_full, s_pad)),
        const((n_full, n_pad)), const((n_full, n_pad)),
        const((s_pad, d)), const((s_pad, d)),
        const((n_pad, d)), const((n_pad, d)),
        const((n_pad, d)), const((n_pad, d)),      # i2t select_para (re, im)
        const((d, d)), const((1, d)),              # i2t conv1x1 (w, b)
        const((s_pad, d)), const((s_pad, d)),      # t2i select_para (re, im)
        const((d, d)), const((1, d)),              # t2i conv1x1 (w, b)
        const((s_full, d)), const((n_full, d)),    # positional embeddings
    ]
    out_specs = [pl.BlockSpec((s_full, tbd), lambda i: (0, i)),
                 pl.BlockSpec((n_full, tbd), lambda i: (0, i))]
    out_shape = [jax.ShapeDtypeStruct((s_full, bd), jnp.float32),
                 jax.ShapeDtypeStruct((n_full, bd), jnp.float32)]

    kernel = functools.partial(_ft_freq_kernel, tb=tb, d=d, add_pos=add_pos)
    return pl.pallas_call(
        kernel,
        grid=(n_blocks,),
        in_specs=in_specs,
        out_specs=out_specs,
        out_shape=out_shape,
        compiler_params=pltpu.CompilerParams(
            dimension_semantics=("parallel",), vmem_limit_bytes=VMEM_LIMIT),
    )(text_t, image_t,
      common["ftc"], common["fts"], common["fic"], common["fis"],
      common["gtc"], common["gts"], common["gic"], common["gis"],
      lp["fbt_re"], lp["fbt_im"], lp["fbi_re"], lp["fbi_im"],
      lp["i2t_p_re"], lp["i2t_p_im"], lp["i2t_w"], lp["i2t_b"],
      lp["t2i_p_re"], lp["t2i_p_im"], lp["t2i_w"], lp["t2i_b"],
      pe_t, pe_i)


# ============================ fusion + MLP head (pooled inputs only) ============================

def _head_kernel(tp_ref, ip_ref, wt_ref, wi_ref,
                 fc1_w_ref, fc1_b_ref, n1g_ref, n1b_ref,
                 fc2_w_ref, fc2_b_ref, n2g_ref, n2b_ref,
                 fc3_w_ref, fc3_b_ref,
                 f_ref, logit_ref, *, batch, dense_bf16):
    tp = tp_ref[...]   # (B, D) max over sequence positions (from add_norm_pool)
    ip = ip_ref[...]   # (B, D) max over image patches

    def log_softmax(z):
        zmax = jnp.max(z, axis=-1, keepdims=True)
        zs = z - zmax
        return zs - jnp.log(jnp.sum(jnp.exp(zs), axis=-1, keepdims=True))

    # Fusion: JS-divergence gate (F.kl_div(log_softmax(M), softmax(x), 'batchmean'))
    m = 0.5 * (tp + ip)
    log_m = log_softmax(m)
    log_p = log_softmax(tp)
    log_q = log_softmax(ip)
    kl1 = jnp.sum(jnp.exp(log_p) * (log_p - log_m)) / batch
    kl2 = jnp.sum(jnp.exp(log_q) * (log_q - log_m)) / batch
    alpha = 0.5 * kl1 + 0.5 * kl2
    fused = (_mxu_dot(tp, wt_ref[...], dense_bf16)
             + _mxu_dot(ip, wi_ref[...], dense_bf16))
    f = (1.0 - alpha) * fused + alpha * tp + alpha * ip
    f_ref[...] = f

    # MLP head: fc1 -> LN -> ReLU -> fc2 -> LN -> ReLU -> fc3
    h = _mxu_dot(f, fc1_w_ref[...], dense_bf16) + fc1_b_ref[...]
    h = jnp.maximum(_ln(h, n1g_ref[...], n1b_ref[...]), 0.0)
    h = _mxu_dot(h, fc2_w_ref[...], dense_bf16) + fc2_b_ref[...]
    h = jnp.maximum(_ln(h, n2g_ref[...], n2b_ref[...]), 0.0)
    logit_ref[...] = _mxu_dot(h, fc3_w_ref[...], dense_bf16) + fc3_b_ref[...]


def head(t_pool, im_pool, params, cfg):
    b, d = t_pool.shape
    c = cfg["num_class"]
    kernel = functools.partial(_head_kernel, batch=float(b), dense_bf16=DENSE_MXU_BF16)
    return pl.pallas_call(
        kernel,
        out_shape=(jax.ShapeDtypeStruct((b, d), jnp.float32),
                   jax.ShapeDtypeStruct((b, c), jnp.float32)),
        compiler_params=pltpu.CompilerParams(vmem_limit_bytes=VMEM_LIMIT),
    )(t_pool, im_pool,
      params["fusion_wt"], params["fusion_wi"],
      params["fc1_w"], params["fc1_b"], params["mlp_ln1_g"], params["mlp_ln1_b"],
      params["fc2_w"], params["fc2_b"], params["mlp_ln2_g"], params["mlp_ln2_b"],
      params["fc3_w"], params["fc3_b"])


# ============================ parameters / constants ============================

def dft_mats(length, pad_to):
    """Real matrices implementing rfft/irfft (norm='ortho'); spectral dim zero-padded."""
    s = length // 2 + 1
    t = np.arange(length)
    f = np.arange(s)
    scale = 1.0 / np.sqrt(length)
    ang_f = 2.0 * np.pi * np.outer(f, t) / length                   # (s, L)
    fwd_cos = np.zeros((pad_to, length), np.float32)
    fwd_sin = np.zeros((pad_to, length), np.float32)
    fwd_cos[:s] = np.cos(ang_f) * scale
    fwd_sin[:s] = -np.sin(ang_f) * scale
    c = np.full((s,), 2.0)
    c[0] = 1.0
    if length % 2 == 0:
        c[-1] = 1.0
    ang_i = 2.0 * np.pi * np.outer(t, f) / length                   # (L, s)
    inv_cos = np.zeros((length, pad_to), np.float32)
    inv_sin = np.zeros((length, pad_to), np.float32)
    inv_cos[:, :s] = np.cos(ang_i) * c[None, :] * scale
    inv_sin[:, :s] = -np.sin(ang_i) * c[None, :] * scale
    return tuple(jnp.asarray(a) for a in (fwd_cos, fwd_sin, inv_cos, inv_sin))


def text_position_embedding(seq_len, d_model):
    pe = np.zeros((seq_len, d_model), np.float32)
    position = np.arange(seq_len).astype(np.float64)[:, None]
    div_term = np.exp(np.arange(0, d_model, 2).astype(np.float64)
                      * -(math.log(10000.0) / d_model))
    pe[:, 0::2] = np.sin(position * div_term)
    pe[:, 1::2] = np.cos(position * div_term)
    return jnp.asarray(pe)


def init_params(key, cfg):
    d = cfg["d_model"]
    s = cfg["seq_len"] // 2 + 1
    grid = cfg["img_size"] // cfg["patch_size"]
    num_patches = grid * grid
    n = num_patches // 2 + 1
    s_pad = _round_up(s, 8)
    n_pad = _round_up(n, 8)
    hid = int(cfg["mlp_ratio"] * d)
    nf = cfg["num_filter"]

    keys = iter(jax.random.split(key, 128))
    nk = lambda: next(keys)
    rnd = lambda shape, scale=1.0: jax.random.normal(nk(), shape, jnp.float32) * scale

    # cos((2(k+1)-1)*pi/2*num_filter): matches the torch code's precedence (mult by nf).
    cos_k = jnp.asarray(np.array(
        [np.cos((2.0 * (k + 1) - 1.0) * MODEL_PI / 2.0 * nf) for k in range(nf)],
        np.float32))

    def filter_bank(num_freq, pad_to):
        # power = x*x/len and sum_k bank[k]*cos_k are both linear in the bank
        # -> pre-sum over k and fold the 1/len scale at init; zero-pad spectral dim.
        fb = rnd((nf, num_freq, d, 2))
        fb_sum = jnp.einsum("k,kfdc->fdc", cos_k, fb) * (1.0 / float(num_freq))
        re = jnp.zeros((pad_to, d), jnp.float32).at[:num_freq].set(fb_sum[..., 0])
        im = jnp.zeros((pad_to, d), jnp.float32).at[:num_freq].set(fb_sum[..., 1])
        return re, im

    def padded_select(num_freq, pad_to):
        # select_para with the avg-pool 1/len folded in, zero-padded spectral dim.
        p = rnd((num_freq, d, 2)) * (1.0 / float(num_freq))
        re = jnp.zeros((pad_to, d), jnp.float32).at[:num_freq].set(p[..., 0])
        im = jnp.zeros((pad_to, d), jnp.float32).at[:num_freq].set(p[..., 1])
        return re, im

    def add_norm_params():
        return dict(
            ln1_g=jnp.ones((1, d), jnp.float32), ln1_b=jnp.zeros((1, d), jnp.float32),
            ff_w1=rnd((d, d), 1.0 / math.sqrt(d)), ff_b1=jnp.zeros((1, d), jnp.float32),
            ff_w2=rnd((d, d), 1.0 / math.sqrt(d)), ff_b2=jnp.zeros((1, d), jnp.float32),
            ln2_g=jnp.ones((1, d), jnp.float32), ln2_b=jnp.zeros((1, d), jnp.float32),
        )

    ft_layers = []
    for _ in range(cfg["num_layer"]):
        fbt_re, fbt_im = filter_bank(s, s_pad)
        fbi_re, fbi_im = filter_bank(n, n_pad)
        i2t_re, i2t_im = padded_select(n, n_pad)   # Image2TextGate pools over n
        t2i_re, t2i_im = padded_select(s, s_pad)   # Text2ImageGate pools over s
        # NOTE: text_weight / image_weight of FtLayer are unused when use_bank=True.
        ft_layers.append(dict(
            fbt_re=fbt_re, fbt_im=fbt_im, fbi_re=fbi_re, fbi_im=fbi_im,
            i2t_p_re=i2t_re, i2t_p_im=i2t_im,
            i2t_w=rnd((d, d), 1.0 / math.sqrt(d)),   # Conv1d(k=1) weight stored (in, out)
            i2t_b=rnd((1, d), 0.1),
            t2i_p_re=t2i_re, t2i_p_im=t2i_im,
            t2i_w=rnd((d, d), 1.0 / math.sqrt(d)),
            t2i_b=rnd((1, d), 0.1),
            text_an=add_norm_params(),
            image_an=add_norm_params(),
        ))

    ftc, fts, gtc, gts = dft_mats(cfg["seq_len"], s_pad)
    fic, fis, gic, gis = dft_mats(num_patches, n_pad)

    patch_in = cfg["in_channels"] * cfg["patch_size"] ** 2
    return dict(
        embed=rnd((cfg["vocab_size"], cfg["d_text"])),
        enc_w=rnd((cfg["d_text"], d), 1.0 / math.sqrt(cfg["d_text"])),
        enc_b=jnp.zeros((1, d), jnp.float32),
        enc_ln_g=jnp.ones((1, d), jnp.float32),
        enc_ln_b=jnp.zeros((1, d), jnp.float32),
        pe=text_position_embedding(cfg["seq_len"], d),
        patch_w=rnd((patch_in, d), 1.0 / math.sqrt(patch_in)),
        patch_b=jnp.zeros((1, d), jnp.float32),
        img_pos_embed=rnd((1, num_patches, d), 0.02),
        ft_common=dict(ftc=ftc, fts=fts, fic=fic, fis=fis,
                       gtc=gtc, gts=gts, gic=gic, gis=gis),
        ft_layers=ft_layers,
        fusion_wt=rnd((d, d), 1.0 / math.sqrt(d)),
        fusion_wi=rnd((d, d), 1.0 / math.sqrt(d)),
        fc1_w=rnd((d, hid), 1.0 / math.sqrt(d)), fc1_b=jnp.zeros((1, hid), jnp.float32),
        mlp_ln1_g=jnp.ones((1, hid), jnp.float32), mlp_ln1_b=jnp.zeros((1, hid), jnp.float32),
        fc2_w=rnd((hid, d), 1.0 / math.sqrt(hid)), fc2_b=jnp.zeros((1, d), jnp.float32),
        mlp_ln2_g=jnp.ones((1, d), jnp.float32), mlp_ln2_b=jnp.zeros((1, d), jnp.float32),
        fc3_w=rnd((d, cfg["num_class"]), 1.0 / math.sqrt(d)),
        fc3_b=jnp.zeros((1, cfg["num_class"]), jnp.float32),
    )


# ============================ forward pass ============================

def fsru_forward(params, tokens, image, cfg):
    b, seq_len = tokens.shape
    d = cfg["d_model"]

    # ---- text: embedding gather (XLA) -> fused Linear+LayerNorm.  Rows are kept
    # in (seq, batch) order so (S*B, D) <-> (S, B*D) is a free reshape.
    emb = jnp.take(params["embed"], tokens, axis=0)                  # (B, S, d_text)
    emb_sb = emb.transpose(1, 0, 2).reshape(seq_len * b, cfg["d_text"])
    t_rows = linear_ln(emb_sb, params["enc_w"], params["enc_b"],
                       params["enc_ln_g"], params["enc_ln_b"])       # (S*B, D)

    # ---- image patch embedding: NCHW conv (kernel=stride=patch) == matmul,
    # patches in (patch, batch) row order.
    p = cfg["patch_size"]; c = cfg["in_channels"]; g = cfg["img_size"] // p
    n_patch = g * g
    patches = image.reshape(b, c, g, p, g, p).transpose(2, 4, 0, 1, 3, 5)
    patches = patches.reshape(n_patch * b, c * p * p)
    im_rows = linear(patches, params["patch_w"], params["patch_b"])  # (N*B, D)

    pe_t = params["pe"]
    pe_i = params["img_pos_embed"][0]
    layers = params["ft_layers"]

    if not layers:
        # Degenerate config fallback (normal configs have num_layer >= 1).
        t_rows = (t_rows.reshape(seq_len, b, d) + pe_t[:, None, :]).reshape(seq_len * b, d)
        im_rows = (im_rows.reshape(n_patch, b, d) + pe_i[:, None, :]).reshape(n_patch * b, d)
        t_pool = jnp.max(t_rows.reshape(seq_len, b, d), axis=0)
        im_pool = jnp.max(im_rows.reshape(n_patch, b, d), axis=0)
    else:
        common = params["ft_common"]
        tb = _pick_tb(b, d, seq_len, n_patch,
                      common["ftc"].shape[0], common["fic"].shape[0])
        t_freq = t_rows.reshape(seq_len, b * d)
        i_freq = im_rows.reshape(n_patch, b * d)
        t_pool = im_pool = None
        for li, lp in enumerate(layers):
            # Layer 0 folds the positional-embedding adds; every layer fuses the
            # residual add into its outputs (irfft + input).
            t_f, im_f = ft_freq(t_freq, i_freq, common, lp, tb, d,
                                add_pos=(li == 0), pe_t=pe_t, pe_i=pe_i)
            if li == len(layers) - 1:
                # Last layer: AddNorm + max-pool fused (only (B, D) ever leaves VMEM).
                t_pool = add_norm_pool(t_f.reshape(seq_len * b, d),
                                       lp["text_an"], seq_len, b)
                im_pool = add_norm_pool(im_f.reshape(n_patch * b, d),
                                        lp["image_an"], n_patch, b)
            else:
                t_freq = add_norm(t_f.reshape(seq_len * b, d),
                                  lp["text_an"]).reshape(seq_len, b * d)
                i_freq = add_norm(im_f.reshape(n_patch * b, d),
                                  lp["image_an"]).reshape(n_patch, b * d)

    # ---- fused JS-div fusion + MLP head on the pooled (B, D) tensors ----
    f, logits = head(t_pool, im_pool, params, cfg)
    return t_pool, im_pool, (logits, None), f


if __name__ == "__main__":
    cfg = dict(vocab_size=50, d_text=16, seq_len=8, img_size=16, patch_size=8,
               d_model=32, num_filter=2, num_class=2, num_layer=2,
               in_channels=3, mlp_ratio=4.0)
    key = jax.random.PRNGKey(0)
    kp, kt, ki = jax.random.split(key, 3)
    params = init_params(kp, cfg)
    tokens = jax.random.randint(kt, (2, cfg["seq_len"]), 0, cfg["vocab_size"],
                                dtype=jnp.int32)
    image = jax.random.normal(
        ki, (2, cfg["in_channels"], cfg["img_size"], cfg["img_size"]), jnp.float32)

    t_pool, im_pool, (logits, _), f = fsru_forward(params, tokens, image, cfg)
    jax.block_until_ready((t_pool, im_pool, logits, f))
    assert t_pool.shape == (2, cfg["d_model"])
    assert im_pool.shape == (2, cfg["d_model"])
    assert logits.shape == (2, cfg["num_class"])
    assert f.shape == (2, cfg["d_model"])
    print("KERNEL_OK")
</pallas_src>

<mosaic_0001>
module attributes {stable_mosaic.version = 11 : i64} {
  func.func @_linear_ln_kernel(%arg0: i32, %arg1: memref<16x16xf32, #tpu.memory_space<vmem>>, %arg2: memref<16x32xf32, #tpu.memory_space<vmem>>, %arg3: memref<1x32xf32, #tpu.memory_space<vmem>>, %arg4: memref<1x32xf32, #tpu.memory_space<vmem>>, %arg5: memref<1x32xf32, #tpu.memory_space<vmem>>, %arg6: memref<16x32xf32, #tpu.memory_space<vmem>>) attributes {dimension_semantics = [#tpu.dimension_semantics<parallel>], iteration_bounds = array<i64: 1>, scalar_prefetch = 0 : i64, scratch_operands = 0 : i64, tpu.core_type = #tpu.core_type<tc>, window_params = [{transform_indices = @transform_0, window_bounds = array<i64: 16, 16>}, {pipeline_mode = #tpu.pipeline_mode<synchronous>, transform_indices = @transform_1, window_bounds = array<i64: 16, 32>}, {pipeline_mode = #tpu.pipeline_mode<synchronous>, transform_indices = @transform_2, window_bounds = array<i64: 1, 32>}, {pipeline_mode = #tpu.pipeline_mode<synchronous>, transform_indices = @transform_3, window_bounds = array<i64: 1, 32>}, {pipeline_mode = #tpu.pipeline_mode<synchronous>, transform_indices = @transform_4, window_bounds = array<i64: 1, 32>}, {transform_indices = @transform_5, window_bounds = array<i64: 16, 32>}]} {
    %c0 = arith.constant 0 : index
    %c0_0 = arith.constant 0 : index
    %0 = vector.load %arg1[%c0, %c0_0] : memref<16x16xf32, #tpu.memory_space<vmem>>, vector<16x16xf32>
    %c0_1 = arith.constant 0 : index
    %c0_2 = arith.constant 0 : index
    %1 = vector.load %arg2[%c0_1, %c0_2] : memref<16x32xf32, #tpu.memory_space<vmem>>, vector<16x32xf32>
    %cst = arith.constant dense<0.000000e+00> : vector<16x32xf32>
    %2 = tpu.matmul %0, %1, %cst {dimension_numbers = #tpu.dot_dimension_numbers<[1], [0], [0], [1], [0, 0, 1, 1], [], []>} : vector<16x16xf32>, vector<16x32xf32>, vector<16x32xf32> -> vector<16x32xf32>
    %c0_3 = arith.constant 0 : index
    %c0_4 = arith.constant 0 : index
    %3 = vector.load %arg3[%c0_3, %c0_4] : memref<1x32xf32, #tpu.memory_space<vmem>>, vector<1x32xf32>
    %4 = vector.broadcast %3 : vector<1x32xf32> to vector<16x32xf32>
    %5 = arith.addf %2, %4 : vector<16x32xf32>
    %c0_5 = arith.constant 0 : index
    %c0_6 = arith.constant 0 : index
    %6 = vector.load %arg4[%c0_5, %c0_6] : memref<1x32xf32, #tpu.memory_space<vmem>>, vector<1x32xf32>
    %c0_7 = arith.constant 0 : index
    %c0_8 = arith.constant 0 : index
    %7 = vector.load %arg5[%c0_7, %c0_8] : memref<1x32xf32, #tpu.memory_space<vmem>>, vector<1x32xf32>
    %cst_9 = arith.constant dense<0.000000e+00> : vector<16xf32>
    %8 = vector.multi_reduction <add>, %5, %cst_9 [1] : vector<16x32xf32> to vector<16xf32>
    %9 = vector.shape_cast %8 : vector<16xf32> to vector<16x1xf32>
    %cst_10 = arith.constant 3.200000e+01 : f32
    %10 = vector.broadcast %cst_10 : f32 to vector<16x1xf32>
    %11 = arith.divf %9, %10 : vector<16x1xf32>
    %12 = vector.broadcast %11 : vector<16x1xf32> to vector<16x32xf32>
    %13 = arith.subf %5, %12 : vector<16x32xf32>
    %14 = arith.mulf %13, %13 : vector<16x32xf32>
    %cst_11 = arith.constant dense<0.000000e+00> : vector<16xf32>
    %15 = vector.multi_reduction <add>, %14, %cst_11 [1] : vector<16x32xf32> to vector<16xf32>
    %16 = vector.shape_cast %15 : vector<16xf32> to vector<16x1xf32>
    %cst_12 = arith.constant 3.200000e+01 : f32
    %17 = vector.broadcast %cst_12 : f32 to vector<16x1xf32>
    %18 = arith.divf %16, %17 : vector<16x1xf32>
    %19 = vector.broadcast %11 : vector<16x1xf32> to vector<16x32xf32>
    %20 = arith.subf %5, %19 : vector<16x32xf32>
    %cst_13 = arith.constant 9.99999974E-6 : f32
    %21 = vector.broadcast %cst_13 : f32 to vector<16x1xf32>
    %22 = arith.addf %18, %21 : vector<16x1xf32>
    %23 = math.rsqrt %22 : vector<16x1xf32>
    %24 = vector.broadcast %23 : vector<16x1xf32> to vector<16x32xf32>
    %25 = arith.mulf %20, %24 : vector<16x32xf32>
    %26 = vector.broadcast %6 : vector<1x32xf32> to vector<16x32xf32>
    %27 = arith.mulf %25, %26 : vector<16x32xf32>
    %28 = vector.broadcast %7 : vector<1x32xf32> to vector<16x32xf32>
    %29 = arith.addf %27, %28 : vector<16x32xf32>
    %c0_14 = arith.constant 0 : index
    %c0_15 = arith.constant 0 : index
    %30 = vector.load %arg6[%c0_14, %c0_15] : memref<16x32xf32, #tpu.memory_space<vmem>>, vector<16x32xf32>
    tpu.vector_store %arg6[%c0_14, %c0_15], %29 {strides = array<i32>} : memref<16x32xf32, #tpu.memory_space<vmem>>, vector<16x32xf32>,
    return
  }
  func.func @transform_0(%arg0: i32) -> (i32, i32) {
    %c0_i32 = arith.constant 0 : i32
    %c0_i32_0 = arith.constant 0 : i32
    return %arg0, %c0_i32 : i32, i32
  }
  func.func @transform_1(%arg0: i32) -> (i32, i32) {
    %c0_i32 = arith.constant 0 : i32
    %c0_i32_0 = arith.constant 0 : i32
    %c0_i32_1 = arith.constant 0 : i32
    return %c0_i32, %c0_i32_0 : i32, i32
  }
  func.func @transform_2(%arg0: i32) -> (i32, i32) {
    %c0_i32 = arith.constant 0 : i32
    %c0_i32_0 = arith.constant 0 : i32
    %c0_i32_1 = arith.constant 0 : i32
    return %c0_i32, %c0_i32_0 : i32, i32
  }
  func.func @transform_3(%arg0: i32) -> (i32, i32) {
    %c0_i32 = arith.constant 0 : i32
    %c0_i32_0 = arith.constant 0 : i32
    %c0_i32_1 = arith.constant 0 : i32
    return %c0_i32, %c0_i32_0 : i32, i32
  }
  func.func @transform_4(%arg0: i32) -> (i32, i32) {
    %c0_i32 = arith.constant 0 : i32
    %c0_i32_0 = arith.constant 0 : i32
    %c0_i32_1 = arith.constant 0 : i32
    return %c0_i32, %c0_i32_0 : i32, i32
  }
  func.func @transform_5(%arg0: i32) -> (i32, i32) {
    %c0_i32 = arith.constant 0 : i32
    %c0_i32_0 = arith.constant 0 : i32
    return %arg0, %c0_i32 : i32, i32
  }
}

</mosaic_0001>

<bundles_post_ra>
// kernel: tpu_custom_call.1
= control target key start
LH: loop header
LB: loop body
LE: loop exit
PB: predicated region body
PF: predicated region fallthrough
CT: control target
= control target key end

     0   :  { %10 = vsyncpa [#allocation3], 0  ;;  %s367_s0 = inlined_call_operand.hbm [shape: f32[16,16], index: 0, kind: input, shape index: {}]   ;;  %s368_s1 = inlined_call_operand.hbm [shape: f32[16,32], index: 1, kind: input, shape index: {}]   ;;  %s369_s2 = inlined_call_operand.vmem [shape: f32[1,32], index: 2, kind: input, shape index: {}]   ;;  %s370_s3 = inlined_call_operand.vmem [shape: f32[1,32], index: 3, kind: input, shape index: {}]   ;;  %s371_s4 = inlined_call_operand.vmem [shape: f32[1,32], index: 4, kind: input, shape index: {}]   ;;  %s372_s5 = inlined_call_operand.hbm [shape: f32[16,32], index: 5, kind: output, shape index: {}]  }
   0x1   :  { %11 = vsyncpa [#allocation6], 0 }
   0x2   :  { %12 = vsyncpa [#allocation4], 0  ;;  %s299_s18 = smov [#allocation2]  }
   0x3   :  { %s18_s19 = sshll.u32 %s299_s18, 4  ;;  %s19_s19 = int_to_ptr.vmem [resolvable:$true] %s18_s19 }
   0x4   :  { %s241_s20 = scalar_lea.vmem %s19_s19, 256  ;;  %p246_p1 = scmp.lt.s32.totalorder %s19_s19, %s19_s19 }
   0x5   :  { %p242_p0 = scmp.ne.s32.totalorder %s19_s19, %s241_s20  ;;  %p247_p2 = scmp.lt.s32.totalorder %s241_s20, %s241_s20 }
   0x7   :  { %p248_p3 = por %p247_p2, %p246_p1 }
   0x9   :  { %p249_p4 = pnand %p248_p3, %p242_p0 }
   0xb   :  { %252 = shalt.err (!%p249_p4)
}
   0xc   :  { %s300_s21 = smov 128   ;;  %s301_s22 = smov 8  }
   0xd   :  { %24 = dma.hbm_to_vmem [thread:$0]  %s367_s0, 256, %s19_s19, [#allocation3], %s300_s21, %s300_s21, %s301_s22  }
   0xe   :  { %s302_s25 = smov [#allocation5]  }
   0xf   :  { %s30_s26 = sshll.u32 %s302_s25, 4  ;;  %s31_s26 = int_to_ptr.vmem [resolvable:$true] %s30_s26 }
  0x10   :  { %s261_s27 = scalar_lea.vmem %s31_s26, 256  ;;  %p266_p6 = scmp.lt.s32.totalorder %s31_s26, %s31_s26 }
  0x11   :  { %p262_p5 = scmp.ne.s32.totalorder %s31_s26, %s261_s27  ;;  %p267_p7 = scmp.lt.s32.totalorder %s261_s27, %s261_s27 }
  0x13   :  { %p268_p8 = por %p267_p7, %p266_p6 }
  0x15   :  { %p269_p9 = pnand %p268_p8, %p262_p5 }
  0x17   :  { %272 = shalt.err (!%p269_p9)
}
  0x18   :  { %36 = dma.hbm_to_vmem [thread:$0]  %s368_s1, 256, %s31_s26, [#allocation6], %s300_s21, %s300_s21, %s301_s22  }
  0x19   :  { %293 = dma.done.wait [#allocation3], 256  }
  0x1a   :  { %294 = vsyncadd [#allocation3], 4294967040 }
  0x1b   :  { %295 = dma.done.wait [#allocation6], 256  }
  0x1c   :  { %296 = vsyncadd [#allocation6], 4294967040  ;;  %vm60_vm0 = vcmask 130048   ;;  %v52_v0 = vld [vmem:[#allocation5 + $0x8] sm:$0xff]  ;;  %v51_v1 = vld [vmem:[#allocation5] sm:$0xff]  ;;  %vm144_vm1 = vcmask 261120  }
  0x1d   :  { %v49_v2 = vld [vmem:[#allocation2] sm:$0xff]  ;;  %217 = vmatprep.subr.mxu0 %v52_v0  ;;  %v50_v3 = vld [vmem:[#allocation2 + $0x8] sm:$0xff]  ;;  %s303_s8 = smov [#allocation7]  }
  0x1e   :  { %221 = vmatprep.mubr.msk.f32.mxu0 %vm60_vm0, %v49_v2  ;;  %218 = vmatpush3.msra.mxu0 %v52_v0  ;;  %v208_v5 = vld [vmem:[%s369_s2] ss:$0 sm:$0xff]  ;;  %s195_s9 = sshll.u32 %s303_s8, 4  ;;  %s196_s9 = int_to_ptr.vmem [resolvable:$true] %s195_s9 }
  0x1f   :  { %219 = vmatprep.subr.mxu0 %v51_v1  ;;  %v211_v28 = vld [vmem:[%s370_s3] ss:$0 sm:$0xff]  ;;  %s273_s10 = scalar_lea.vmem %s196_s9, 256  ;;  %p278_p11 = scmp.lt.s32.totalorder %s196_s9, %s196_s9 }
  0x20   :  { %220 = vmatpush3.msra.mxu0 %v51_v1  ;;  %v212_v30 = vld [vmem:[%s371_s4] ss:$0 sm:$0xff]  ;;  %p274_p10 = scmp.ne.s32.totalorder %s196_s9, %s273_s10  ;;  %p279_p12 = scmp.lt.s32.totalorder %s273_s10, %s273_s10 }
  0x21   :  { %222 = vmatmul.mubr.msk.f32.vlgmr.msra.gmra.mxu0 %vm60_vm0, %v50_v3 }
  0x22   :  { %p280_p13 = por %p279_p12, %p278_p11 }
  0x24   :  { %p281_p0 = pnand %p280_p13, %p274_p10 }
  0xe1   :  { %v223_v4 = vpop.f32.mrf.mxu0 }
  0xe2   :  { %v139_v8 = vadd.f32 %v223_v4, %v208_v5 }
  0xe3   :  { %v133_v6 = vpop.f32.mrf.mxu0 }
  0xe4   :  { %v134_v7 = vadd.f32 %v208_v5, %v133_v6  ;;  %v148_v10 = vsel %vm144_vm1, %v139_v8, 0.0 }
  0xe6   :  { %v145_v9 = vsel %vm144_vm1, %v134_v7, 0.0 }
  0xe7   :  { %146 = vadd.xlane.f32.xlu0 %v145_v9 }
  0xeb   :  { %149 = vadd.xlane.f32.xlu0 %v148_v10 }
 0x170   :  { %v147_v11 = vpop.xlane.xlu0 %146 }
 0x171   :  { %v152_v12 = vmul.f32 0.03125, %v147_v11 }
 0x173   :  { %v154_v13 = vsub.f32 %v134_v7, %v152_v12 }
 0x174   :  { %v150_v14 = vpop.xlane.xlu0 %149 }
 0x175   :  { %v153_v15 = vmul.f32 0.03125, %v150_v14  ;;  %v156_v16 = vmul.f32 %v154_v13, %v154_v13 }
 0x177   :  { %v155_v17 = vsub.f32 %v139_v8, %v153_v15  ;;  %v158_v18 = vsel %vm144_vm1, %v156_v16, 0.0 }
 0x178   :  { %159 = vadd.xlane.f32.xlu1 %v158_v18 }
 0x179   :  { %v157_v19 = vmul.f32 %v155_v17, %v155_v17 }
 0x17b   :  { %v161_v20 = vsel %vm144_vm1, %v157_v19, 0.0 }
 0x17c   :  { %162 = vadd.xlane.f32.xlu1 %v161_v20 }
 0x201   :  { %v160_v21 = vpop.xlane.xlu1 %159 }
 0x202   :  { %v164_v22 = vmul.f32 0.03125, %v160_v21 }
 0x204   :  { %v166_v23 = vadd.f32 1e-05, %v164_v22 }
 0x205   :  { %v163_v24 = vpop.xlane.xlu1 %162 }
 0x206   :  { %229 = vrsqrt.f32 %v166_v23  ;;  %v165_v25 = vmul.f32 0.03125, %v163_v24 }
 0x208   :  { %v167_v26 = vadd.f32 1e-05, %v165_v25 }
 0x20a   :  { %231 = vrsqrt.f32 %v167_v26 }
 0x213   :  { %v230_v27 = vpop.eup %229 }
 0x214   :  { %v170_v29 = vmul.f32 %v230_v27, %v154_v13 }
 0x216   :  { %v178_v31 = vmul.f32 %v211_v28, %v170_v29 }
 0x217   :  { %v232_v32 = vpop.eup %231 }
 0x218   :  { %v171_v33 = vmul.f32 %v232_v32, %v155_v17  ;;  %v186_v34 = vadd.f32 %v212_v30, %v178_v31 }
 0x21a   :  { %v179_v35 = vmul.f32 %v211_v28, %v171_v33  ;;  %188 = vst.msk [vmem:[#allocation7] sm:$0xff] %vm144_vm1, %v186_v34 }
 0x21c   :  { %v187_v36 = vadd.f32 %v212_v30, %v179_v35 }
 0x21e   :  { %189 = vst.msk [vmem:[#allocation7 + $0x8] sm:$0xff] %vm144_vm1, %v187_v36 }
 0x21f   :  { %284 = shalt.err (!%p281_p0)
}
 0x220   :  { %201 = dma.vmem_to_hbm [thread:$0]  %s196_s9, 256, %s372_s5, [#allocation4], %s300_s21, %s300_s21, %s301_s22  }
 0x221   :  { %297 = dma.done.wait [#allocation4], 256  }
 0x222   :  { %298 = vsyncadd [#allocation4], 4294967040 }
 0x223   :  { %205 = vsyncpa [#allocation3], 1 }
 0x224   :  { %206 = vsyncpa [#allocation6], 1 }
 0x225   :  { %207 = vsyncpa [#allocation4], 1 }

</bundles_post_ra>
